<compile_context>
chip_gen: v6e
topology: v6e:2x2x1
jax: 0.10.0
libtpu: 0.0.40
codegen_flags: <defaults>
</compile_context>

<pallas_src>
import functools

import jax
import jax.numpy as jnp
from jax.experimental import pallas as pl
from jax.experimental.pallas import tpu as pltpu

IN_DIM = 384                    # fixed by the module (nn.Linear(384, embed_dim))
EMBED_DIM = 64                  # embed_dim hyper-parameter (small test size)
DEFAULT_TILE_N = 2048           # rows of nodes processed per grid step (mem-bound sweet spot)
VMEM_LIMIT_BYTES = 48 * 1024 * 1024


def _round_up(x, m):
    return (x + m - 1) // m * m


def _content_agg_kernel(e_ref, w_ref, b_ref, o_ref):
    # e_ref: (3, tile_n, 384) stacked metapath embeddings -> sum on the VPU.
    x = e_ref[0] + e_ref[1] + e_ref[2]                               # (tile_n, 384) f32

    # L2 normalization, rewritten as a post-matmul row scale.
    #   s = 1 / max(||x||, 1e-12) = rsqrt(max(sum(x*x), 1e-24))      (rsqrt -> EUP slot)
    sq = jnp.sum(x * x, axis=-1, keepdims=True)                      # (tile_n, 1)
    s = jax.lax.rsqrt(jnp.maximum(sq, 1e-24))

    # Linear layer on the MXU: (tile_n, 384) @ (384, E); scale, add bias, ReLU.
    y = jnp.dot(x, w_ref[...], preferred_element_type=jnp.float32)   # (tile_n, E)
    y = s * y + b_ref[...]                                           # bias AFTER the scale
    o_ref[...] = jnp.maximum(y, 0.0).astype(o_ref.dtype)


@functools.partial(jax.jit, static_argnames=("tile_n",))
def _content_agg_pallas(embeds, w, b, *, tile_n):
    _, n, d = embeds.shape
    assert d == IN_DIM
    embed_dim = w.shape[1]

    grid_n = pl.cdiv(n, tile_n)
    padded_n = grid_n * tile_n
    if padded_n != n:  # ragged tail: zero-pad rows (padded rows give finite garbage, sliced off)
        embeds = jnp.pad(embeds, ((0, 0), (0, padded_n - n), (0, 0)))

    cost = pl.CostEstimate(
        flops=2 * padded_n * IN_DIM * embed_dim + 8 * padded_n * IN_DIM,
        transcendentals=padded_n,
        bytes_accessed=3 * padded_n * IN_DIM * 4
        + padded_n * embed_dim * 4
        + IN_DIM * embed_dim * 4,
    )

    out = pl.pallas_call(
        _content_agg_kernel,
        out_shape=jax.ShapeDtypeStruct((padded_n, embed_dim), jnp.float32),
        grid_spec=pltpu.PrefetchScalarGridSpec(
            num_scalar_prefetch=0,
            grid=(grid_n,),
            in_specs=[
                pl.BlockSpec((3, tile_n, IN_DIM), lambda i: (0, i, 0)),   # stacked embeddings
                pl.BlockSpec((IN_DIM, embed_dim), lambda i: (0, 0)),      # W (resident)
                pl.BlockSpec((1, embed_dim), lambda i: (0, 0)),           # bias (resident)
            ],
            out_specs=pl.BlockSpec((tile_n, embed_dim), lambda i: (i, 0)),
        ),
        compiler_params=pltpu.CompilerParams(
            dimension_semantics=("parallel",),
            vmem_limit_bytes=VMEM_LIMIT_BYTES,
        ),
        cost_estimate=cost,
    )(embeds, w, b)

    if padded_n != n:
        out = out[:n]
    return out


def content_agg_forward(embeds, w, b, *, tile_n=DEFAULT_TILE_N):
    """embeds: (3, N, 384) stacked embed_list, or a list/tuple of three (N, 384) arrays."""
    if isinstance(embeds, (list, tuple)):
        embeds = jnp.stack(embeds, axis=0)
    n = embeds.shape[1]
    # Cap the tile so the grid keeps >= 2 steps (v7x megacore + pipeline overlap);
    # row tile must be a multiple of 8 (sublane).
    tile = min(tile_n, max(8, _round_up(-(-n // 2), 8)))
    return _content_agg_pallas(embeds, w, b, tile_n=tile)


def reference_forward(embeds, w, b):
    x = embeds[0] + embeds[1] + embeds[2]
    norm = jnp.sqrt(jnp.sum(x * x, axis=-1, keepdims=True))
    x = x / jnp.maximum(norm, 1e-12)
    return jnp.maximum(x @ w + b, 0.0)


if __name__ == "__main__":
    key = jax.random.PRNGKey(0)
    ke, kw, kb = jax.random.split(key, 3)

    N = 256  # number of nodes (small test size)

    # Stacked (3, N, 384) = the module's embed_list of three (N, 384) tensors.
    embeds = jax.random.normal(ke, (3, N, IN_DIM), dtype=jnp.float32)

    # Deterministic parameter init (nn.Linear default: U(-1/sqrt(fan_in), 1/sqrt(fan_in))).
    bound = 1.0 / (IN_DIM ** 0.5)
    w = jax.random.uniform(kw, (IN_DIM, EMBED_DIM), jnp.float32, -bound, bound)
    b = jax.random.uniform(kb, (1, EMBED_DIM), jnp.float32, -bound, bound)

    out = content_agg_forward(embeds, w, b)
    out = jax.block_until_ready(out)
    ref = reference_forward(embeds, w, b)
    assert out.shape == (N, EMBED_DIM)
    assert jnp.allclose(out, ref, atol=1e-5, rtol=1e-5)

    # Ragged-N path (exercises wrapper padding + tail slice).
    N2 = 200
    out2 = jax.block_until_ready(content_agg_forward(embeds[:, :N2], w, b))
    ref2 = reference_forward(embeds[:, :N2], w, b)
    assert out2.shape == (N2, EMBED_DIM)
    assert jnp.allclose(out2, ref2, atol=1e-5, rtol=1e-5)

    print("KERNEL_OK")
</pallas_src>

<mosaic_0001>
module attributes {stable_mosaic.version = 11 : i64} {
  func.func @_content_agg_kernel(%arg0: i32, %arg1: memref<3x128x384xf32, #tpu.memory_space<vmem>>, %arg2: memref<384x64xf32, #tpu.memory_space<vmem>>, %arg3: memref<1x64xf32, #tpu.memory_space<vmem>>, %arg4: memref<128x64xf32, #tpu.memory_space<vmem>>) attributes {dimension_semantics = [#tpu.dimension_semantics<parallel>], iteration_bounds = array<i64: 2>, scalar_prefetch = 0 : i64, scratch_operands = 0 : i64, tpu.core_type = #tpu.core_type<tc>, window_params = [{transform_indices = @transform_0, window_bounds = array<i64: 3, 128, 384>}, {pipeline_mode = #tpu.pipeline_mode<synchronous>, transform_indices = @transform_1, window_bounds = array<i64: 384, 64>}, {pipeline_mode = #tpu.pipeline_mode<synchronous>, transform_indices = @transform_2, window_bounds = array<i64: 1, 64>}, {transform_indices = @transform_3, window_bounds = array<i64: 128, 64>}]} {
    %c0 = arith.constant 0 : index
    %c0_0 = arith.constant 0 : index
    %c0_1 = arith.constant 0 : index
    %0 = vector.load %arg1[%c0, %c0_0, %c0_1] : memref<3x128x384xf32, #tpu.memory_space<vmem>>, vector<1x128x384xf32>
    %1 = vector.shape_cast %0 : vector<1x128x384xf32> to vector<128x384xf32>
    %c1 = arith.constant 1 : index
    %c0_2 = arith.constant 0 : index
    %c0_3 = arith.constant 0 : index
    %2 = vector.load %arg1[%c1, %c0_2, %c0_3] : memref<3x128x384xf32, #tpu.memory_space<vmem>>, vector<1x128x384xf32>
    %3 = vector.shape_cast %2 : vector<1x128x384xf32> to vector<128x384xf32>
    %4 = arith.addf %1, %3 : vector<128x384xf32>
    %c2 = arith.constant 2 : index
    %c0_4 = arith.constant 0 : index
    %c0_5 = arith.constant 0 : index
    %5 = vector.load %arg1[%c2, %c0_4, %c0_5] : memref<3x128x384xf32, #tpu.memory_space<vmem>>, vector<1x128x384xf32>
    %6 = vector.shape_cast %5 : vector<1x128x384xf32> to vector<128x384xf32>
    %7 = arith.addf %4, %6 : vector<128x384xf32>
    %8 = arith.mulf %7, %7 : vector<128x384xf32>
    %cst = arith.constant dense<0.000000e+00> : vector<128xf32>
    %9 = vector.multi_reduction <add>, %8, %cst [1] : vector<128x384xf32> to vector<128xf32>
    %10 = vector.shape_cast %9 : vector<128xf32> to vector<128x1xf32>
    %cst_6 = arith.constant 1.000000e-24 : f32
    %11 = vector.broadcast %cst_6 : f32 to vector<128x1xf32>
    %12 = arith.maximumf %10, %11 : vector<128x1xf32>
    %13 = math.rsqrt %12 : vector<128x1xf32>
    %c0_7 = arith.constant 0 : index
    %c0_8 = arith.constant 0 : index
    %14 = vector.load %arg2[%c0_7, %c0_8] : memref<384x64xf32, #tpu.memory_space<vmem>>, vector<384x64xf32>
    %cst_9 = arith.constant dense<0.000000e+00> : vector<128x64xf32>
    %15 = tpu.matmul %7, %14, %cst_9 {dimension_numbers = #tpu.dot_dimension_numbers<[1], [0], [0], [1], [0, 0, 1, 1], [], []>} : vector<128x384xf32>, vector<384x64xf32>, vector<128x64xf32> -> vector<128x64xf32>
    %16 = vector.broadcast %13 : vector<128x1xf32> to vector<128x64xf32>
    %17 = arith.mulf %16, %15 : vector<128x64xf32>
    %c0_10 = arith.constant 0 : index
    %c0_11 = arith.constant 0 : index
    %18 = vector.load %arg3[%c0_10, %c0_11] : memref<1x64xf32, #tpu.memory_space<vmem>>, vector<1x64xf32>
    %19 = vector.broadcast %18 : vector<1x64xf32> to vector<128x64xf32>
    %20 = arith.addf %17, %19 : vector<128x64xf32>
    %cst_12 = arith.constant 0.000000e+00 : f32
    %21 = vector.broadcast %cst_12 : f32 to vector<128x64xf32>
    %22 = arith.maximumf %20, %21 : vector<128x64xf32>
    %c0_13 = arith.constant 0 : index
    %c0_14 = arith.constant 0 : index
    %23 = vector.load %arg4[%c0_13, %c0_14] : memref<128x64xf32, #tpu.memory_space<vmem>>, vector<128x64xf32>
    tpu.vector_store %arg4[%c0_13, %c0_14], %22 {strides = array<i32>} : memref<128x64xf32, #tpu.memory_space<vmem>>, vector<128x64xf32>,
    return
  }
  func.func @transform_0(%arg0: i32) -> (i32, i32, i32) {
    %c0_i32 = arith.constant 0 : i32
    %c0_i32_0 = arith.constant 0 : i32
    %c0_i32_1 = arith.constant 0 : i32
    return %c0_i32, %arg0, %c0_i32_0 : i32, i32, i32
  }
  func.func @transform_1(%arg0: i32) -> (i32, i32) {
    %c0_i32 = arith.constant 0 : i32
    %c0_i32_0 = arith.constant 0 : i32
    %c0_i32_1 = arith.constant 0 : i32
    return %c0_i32, %c0_i32_0 : i32, i32
  }
  func.func @transform_2(%arg0: i32) -> (i32, i32) {
    %c0_i32 = arith.constant 0 : i32
    %c0_i32_0 = arith.constant 0 : i32
    %c0_i32_1 = arith.constant 0 : i32
    return %c0_i32, %c0_i32_0 : i32, i32
  }
  func.func @transform_3(%arg0: i32) -> (i32, i32) {
    %c0_i32 = arith.constant 0 : i32
    %c0_i32_0 = arith.constant 0 : i32
    return %arg0, %c0_i32 : i32, i32
  }
}

</mosaic_0001>

<bundles_post_ra>
// kernel: _content_agg_pallas.1
= control target key start
LH: loop header
LB: loop body
LE: loop exit
PB: predicated region body
PF: predicated region fallthrough
CT: control target
= control target key end

     0   :  { %8 = vsyncpa [#allocation3], 0  ;;  %s2227_s0 = inlined_call_operand.hbm [shape: f32[3,256,384], index: 0, kind: input, shape index: {}]   ;;  %s2228_s1 = inlined_call_operand.vmem [shape: f32[384,64], index: 1, kind: input, shape index: {}]   ;;  %s2229_s2 = inlined_call_operand.hbm [shape: f32[1,64], index: 2, kind: input, shape index: {}]   ;;  %s2230_s3 = inlined_call_operand.vmem [shape: f32[256,64], index: 3, kind: output, shape index: {}]  }
   0x1   :  { %10 = vsyncpa [#allocation3 + $0x1], 0 }
   0x2   :  { %11 = vsyncpa [#allocation5], 0  ;;  %s1572_s12 = smov 0   ;;  %s1574_s13 = smov 0  }
   0x3   :  { %s1576_s14 = smov 0   ;;  %s1578_s15 = smov 0  }
   0x4 LB: > { %s1105_s16 = sadd.s32 4294967295, %s1543_s15   ;;  %s1592_s17 = sadd.s32 1, %s1543_s15   ;;  %s1543_s15 = sphi %s1578_s15, %s2240_s15   ;;  %s1539_s14 = sphi %s1576_s14, %s2239_s14   ;;  %s1535_s13 = sphi %s1574_s13, %s2238_s13   ;;  %s1531_s12 = sphi %s1572_s12, %s2237_s12  }
   0x5   : > { %s21_s18 = ssub.s32 %s1543_s15, %s1592_s17  ;;  %s24_s19 = sadd.s32 1, %s1539_s14 }
   0x6   : > { %p22_p0 = scmp.eq.s32.totalorder %s21_s18, 0  ;;  %p31_p1 = scmp.ne.s32.totalorder %s1539_s14, %s1535_s13 }
   0x7   : > { %p32_p2 = scmp.eq.s32.totalorder %s1543_s15, 0  ;;  %p37_p3 = scmp.ne.s32.totalorder %s1535_s13, %s1531_s12 }
   0x8   : > { %s1602_s20 = scalar_select %p22_p0, %s1539_s14, %s24_s19  }
   0x9   : > { %p1604_p4 = por %p32_p2, %p31_p1  ;;  %p1610_p5 = scmp.eq.s32.totalorder %s1105_s16, 0 }
   0xa   : > { %p1107_p6 = scmp.ge.s32.totalorder %s1543_s15, 1  ;;  %p116_p7 = scmp.lt.s32.totalorder %s1543_s15, 3 }
   0xb   : > { %p1618_p8 = por %p1610_p5, %p37_p3  ;;  %s1545_s25 = smov [#allocation4]  }
   0xc   : > { %p1622_p9 = pnand %p1107_p6, %p116_p7  ;;  %s132_s26 = sshll.u32 %s1545_s25, 4  ;;  %s133_s26 = int_to_ptr.vmem [resolvable:$true] %s132_s26 }
   0xd   : > { %s2234_s23 = scalar_select %p1618_p8, 1, 0 }
   0xe   : > { %p1402_p10 = pneg %p1622_p9  ;;  %s1490_s27 = scalar_lea.vmem %s133_s26, 16 }
   0xf   : > { %p1491_p13 = scmp.ne.s32.totalorder %s133_s26, %s1490_s27  ;;  %s1497_s28 = scalar_lea.vmem %s133_s26, 32 }
  0x10   : > { %p1403_p11 = pnand %p1402_p10, %p1610_p5  ;;  %p1498_p2 = scmp.lt.s32.totalorder %s133_s26, %s133_s26 }
  0x11   : > { %p1499_p3 = scmp.lt.s32.totalorder %s1497_s28, %s1490_s27 }
  0x12   : > { %p1481_p12 = pneg %p1403_p11 }
  0x13   : > { %p1500_p6 = por %p1499_p3, %p1498_p2 }
  0x14   : > { %p1493_p0 = pnand %p1491_p13, %p1481_p12 }
  0x16   : > { %p1494_p1 = pneg %p1493_p0 }
  0x18   : > { %p1501_p7 = pnand %p1500_p6, %p1494_p1 }
  0x1a   : > { %1504 = shalt.err (!%p1501_p7)
}
  0x1b   : > { %1405 = dma.hbm_to_vmem [thread:$0]  (!%p1403_p11), %s2229_s2, 16, %s133_s26, [#allocation5]  }
  0x1c   : > { %p1109_p8 = scmp.ge.s32.totalorder %s1543_s15, 2 }
  0x1e   : > { %139 = sbr.rel (%p1109_p8) target bundleno = 49 (0x31), region = 24 }
  0x23   : > { %s143_s4 = sand.u32 1, %s1539_s14   ;;  %s1387_s5 = smul.u32 6144, %s1543_s15 }
  0x24   : > { %s1386_s6 = smul.u32 1152, %s143_s4  ;;  %s1546_s7 = smov 12288  }
  0x25   : > { %1392 = sst [smem:[#allocation7]] (%p1604_p4), %s1546_s7  ;;  %s154_s11 = scalar_lea.hbm %s2227_s0, %s1387_s5 }
  0x26   : > { %s1391_s8 = scalar_select %p1604_p4, [#allocation0], [#allocation8] }
  0x27   : > { %s147_s18 = scalar_lea.vmem [#allocation2], %s1386_s6  ;;  %s1547_s25 = smov 6144  }
  0x28   : > { %s159_s12 = sld [smem:[%s1391_s8]]   ;;  %s167_s19 = sshll.u32 %s147_s18, 4  ;;  %s168_s19 = int_to_ptr.vmem [resolvable:$true] %s167_s19 }
  0x29   : > { %1393 = sst [smem:[#allocation7 + $0x1]] (%p1604_p4), %s1547_s25  ;;  %s1548_s26 = smov 16  }
  0x2a   : > { %1394 = sst [smem:[#allocation7 + $0x2]] (%p1604_p4), %s1548_s26  ;;  %s1549_s27 = smov 384  }
  0x2b   : > { %1395 = sst [smem:[#allocation7 + $0x3]] (%p1604_p4), %s1549_s27  ;;  %s1550_s28 = smov 24  }
  0x2c   : > { %1396 = sst [smem:[#allocation7 + $0x4]] (%p1604_p4), %s1549_s27  ;;  %s144_s5 = scalar_lea.sflag [#allocation3], %s143_s4 }
  0x2d   : > { %1397 = sst [smem:[#allocation7 + $0x5]] (%p1604_p4), %s1550_s28  ;;  %s1551_s6 = smov 131072  }
  0x2e   : > { %s1113_s29 = sshll.u32 %s159_s12, 26 }
  0x2f   : > { %s1114_s30 = sadd.s32 134217728, %s1113_s29 }
  0x30   : > { %1398 = dma.general (%p1604_p4), %s154_s11, 18432, %s168_s19, %s144_s5, %s1551_s6, [#allocation7], %s1114_s30, 0  }
  0x31 PF: > { %192 = sbr.rel (%p1622_p9) target bundleno = 356 (0x164), region = 32  ;;  %s194_s7 = sand.u32 (!%p1622_p9), 1, %s1535_s13  }
  0x32   : > { %s1388_s8 = smul.u32 (!%p1622_p9), 1152, %s194_s7  ;;  %s195_s9 = scalar_lea.sflag (!%p1622_p9), [#allocation3], %s194_s7 }
  0x33   : > { %p2236_p8 = scmp.ne.s32.totalorder (!%p1622_p9), %s2234_s23, 0 }
  0x34   : > { %s1658_s10 = scalar_lea.vmem (!%p1622_p9), [#allocation2], %s1388_s8 }
  0x36   : > { %1522 = dma.done.wait (%p2236_p8), %s195_s9, 18432  }
  0x37   : > { %1524 = vsyncadd (%p2236_p8), %s195_s9, 4294948864 }
  0x38   : > { %1526 = dma.done.wait (%p1610_p5), [#allocation5], 16  }
  0x39   : > { %1528 = vsyncadd (%p1610_p5), [#allocation5], 4294967280  ;;  %v649_v0 = vld [vmem:[%s2228_s1 + $0xf8] sm:$0xff]  ;;  %v648_v2 = vld [vmem:[%s2228_s1 + $0xf0] sm:$0xff]  ;;  %vm1011_vm0 = vcmask 523264  }
  0x3a   : > { %v633_v1 = vld [vmem:[%s2228_s1 + $0x78] sm:$0xff]  ;;  %1218 = vmatprep.subr.mxu0 %v649_v0  ;;  %v632_v4 = vld [vmem:[%s2228_s1 + $0x70] sm:$0xff]  ;;  %v647_v5 = vld [vmem:[%s2228_s1 + $0xe8] sm:$0xff] }
  0x3b   : > { %v665_v3 = vld [vmem:[%s2228_s1 + $0x178] sm:$0xff]  ;;  %1219 = vmatpush3.msra.mxu0 %v633_v1  ;;  %v664_v6 = vld [vmem:[%s2228_s1 + $0x170] sm:$0xff]  ;;  %v631_v7 = vld [vmem:[%s2228_s1 + $0x68] sm:$0xff] }
  0x3c   : > { %1330 = vmatprep.subr.mxu1 %v665_v3  ;;  %1220 = vmatprep.subr.mxu0 %v648_v2  ;;  %v663_v8 = vld [vmem:[%s2228_s1 + $0x168] sm:$0xff]  ;;  %v646_v9 = vld [vmem:[%s2228_s1 + $0xe0] sm:$0xff]  ;;  %v645_v12 = vld [vmem:[%s2228_s1 + $0xd8] sm:$0xff] }
  0x3d   : > { %1331 = vmatpush3.msra.mxu1 %v665_v3  ;;  %1221 = vmatpush3.msra.mxu0 %v632_v4  ;;  %v630_v10 = vld [vmem:[%s2228_s1 + $0x60] sm:$0xff]  ;;  %v629_v13 = vld [vmem:[%s2228_s1 + $0x58] sm:$0xff]  ;;  %v644_v15 = vld [vmem:[%s2228_s1 + $0xd0] sm:$0xff] }
  0x3e   : > { %1332 = vmatprep.subr.mxu1 %v664_v6  ;;  %1222 = vmatprep.subr.mxu0 %v647_v5  ;;  %v662_v11 = vld [vmem:[%s2228_s1 + $0x160] sm:$0xff]  ;;  %v661_v14 = vld [vmem:[%s2228_s1 + $0x158] sm:$0xff]  ;;  %v628_v16 = vld [vmem:[%s2228_s1 + $0x50] sm:$0xff] }
  0x3f   : > { %1333 = vmatpush3.msra.mxu1 %v664_v6  ;;  %1223 = vmatpush3.msra.mxu0 %v631_v7  ;;  %v660_v17 = vld [vmem:[%s2228_s1 + $0x150] sm:$0xff]  ;;  %v643_v18 = vld [vmem:[%s2228_s1 + $0xc8] sm:$0xff]  ;;  %v642_v21 = vld [vmem:[%s2228_s1 + $0xc0] sm:$0xff] }
  0x40   : > { %1334 = vmatprep.subr.mxu1 %v663_v8  ;;  %1224 = vmatprep.subr.mxu0 %v646_v9  ;;  %v627_v19 = vld [vmem:[%s2228_s1 + $0x48] sm:$0xff]  ;;  %v626_v22 = vld [vmem:[%s2228_s1 + $0x40] sm:$0xff]  ;;  %v641_v23 = vld [vmem:[%s2228_s1 + $0xb8] sm:$0xff] }
  0x41   : > { %1335 = vmatpush3.msra.mxu1 %v663_v8  ;;  %1225 = vmatpush3.msra.mxu0 %v630_v10  ;;  %v659_v20 = vld [vmem:[%s2228_s1 + $0x148] sm:$0xff]  ;;  %v658_v24 = vld [vmem:[%s2228_s1 + $0x140] sm:$0xff]  ;;  %v625_v25 = vld [vmem:[%s2228_s1 + $0x38] sm:$0xff] }
  0x42   : > { %1336 = vmatprep.subr.mxu1 %v662_v11  ;;  %1226 = vmatprep.subr.mxu0 %v645_v12  ;;  %v640_v26 = vld [vmem:[%s2228_s1 + $0xb0] sm:$0xff]  ;;  %v657_v27 = vld [vmem:[%s2228_s1 + $0x138] sm:$0xff]  ;;  %v233_v30 = vld [vmem:[%s1658_s10 + $0x8] sm:$0xff] }
  0x43   : > { %1337 = vmatpush3.msra.mxu1 %v662_v11  ;;  %1227 = vmatpush3.msra.mxu0 %v629_v13  ;;  %v624_v28 = vld [vmem:[%s2228_s1 + $0x30] sm:$0xff]  ;;  %v639_v31 = vld [vmem:[%s2228_s1 + $0xa8] sm:$0xff]  ;;  %v232_v34 = vld [vmem:[%s1658_s10] sm:$0xff] }
  0x44   : > { %1338 = vmatprep.subr.mxu1 %v661_v14  ;;  %1228 = vmatprep.subr.mxu0 %v644_v15  ;;  %v656_v29 = vld [vmem:[%s2228_s1 + $0x130] sm:$0xff]  ;;  %v1120_v32 = vld [vmem:[%s1658_s10 + $0x188] sm:$0xff]  ;;  %v1119_v38 = vld [vmem:[%s1658_s10 + $0x180] sm:$0xff] }
  0x45   : > { %1339 = vmatpush3.msra.mxu1 %v661_v14  ;;  %1229 = vmatpush3.msra.mxu0 %v628_v16  ;;  %v1168_v33 = vld [vmem:[%s1658_s10 + $0x308] sm:$0xff]  ;;  %v330_v37 = vadd.f32 %v1120_v32, %v233_v30  ;;  %v1167_v39 = vld [vmem:[%s1658_s10 + $0x300] sm:$0xff]  ;;  %v329_v41 = vadd.f32 %v1119_v38, %v232_v34  ;;  %v234_v42 = vld [vmem:[%s1658_s10 + $0x10] sm:$0xff] }
  0x46   : > { %1340 = vmatprep.subr.mxu1 %v660_v17  ;;  %1230 = vmatprep.subr.mxu0 %v643_v18  ;;  %v623_v35 = vld [vmem:[%s2228_s1 + $0x28] sm:$0xff]  ;;  %v638_v40 = vld [vmem:[%s2228_s1 + $0xa0] sm:$0xff]  ;;  %v1121_v43 = vld [vmem:[%s1658_s10 + $0x190] sm:$0xff] }
  0x47   : > { %1341 = vmatpush3.msra.mxu1 %v660_v17  ;;  %1231 = vmatpush3.msra.mxu0 %v627_v19  ;;  %v655_v36 = vld [vmem:[%s2228_s1 + $0x128] sm:$0xff]  ;;  %v1169_v44 = vld [vmem:[%s1658_s10 + $0x310] sm:$0xff]  ;;  %v622_v45 = vld [vmem:[%s2228_s1 + $0x20] sm:$0xff]  ;;  %v1785_v47 = vadd.f32 %v1168_v33, %v330_v37  ;;  %v331_v48 = vadd.f32 %v1121_v43, %v234_v42  ;;  %v1793_v53 = vadd.f32 %v1167_v39, %v329_v41 }
  0x48   : > { %1342 = vmatprep.subr.mxu1 %v659_v20  ;;  %1232 = vmatprep.subr.mxu0 %v642_v21  ;;  %v654_v46 = vld [vmem:[%s2228_s1 + $0x120] sm:$0xff]  ;;  %v237_v49 = vld [vmem:[%s1658_s10 + $0x28] sm:$0xff]  ;;  %v637_v52 = vld [vmem:[%s2228_s1 + $0x98] sm:$0xff] }
  0x49   : > { %1343 = vmatpush3.msra.mxu1 %v659_v20  ;;  %1233 = vmatpush3.msra.mxu0 %v626_v22  ;;  %v1124_v50 = vld [vmem:[%s1658_s10 + $0x1a8] sm:$0xff]  ;;  %v236_v55 = vld [vmem:[%s1658_s10 + $0x20] sm:$0xff]  ;;  %v621_v58 = vld [vmem:[%s2228_s1 + $0x18] sm:$0xff]  ;;  %v475_v60 = vmul.f32 %v1785_v47, %v1785_v47  ;;  %v1806_v61 = vadd.f32 %v1169_v44, %v331_v48  ;;  %v474_v8 = vmul.f32 %v1793_v53, %v1793_v53 }
  0x4a   : > { %1344 = vmatprep.subr.mxu1 %v658_v24  ;;  %1234 = vmatprep.subr.mxu0 %v641_v23  ;;  %v1172_v51 = vld [vmem:[%s1658_s10 + $0x328] sm:$0xff]  ;;  %v334_v54 = vadd.f32 %v1124_v50, %v237_v49  ;;  %v1123_v56 = vld [vmem:[%s1658_s10 + $0x1a0] sm:$0xff]  ;;  %v653_v59 = vld [vmem:[%s2228_s1 + $0x118] sm:$0xff] }
  0x4b   : > { %1345 = vmatpush3.msra.mxu1 %v658_v24  ;;  %1235 = vmatpush3.msra.mxu0 %v625_v25  ;;  %v1171_v57 = vld [vmem:[%s1658_s10 + $0x320] sm:$0xff]  ;;  %v333_v62 = vadd.f32 %v1123_v56, %v236_v55  ;;  %v235_v63 = vld [vmem:[%s1658_s10 + $0x18] sm:$0xff]  ;;  %v636_v2 = vld [vmem:[%s2228_s1 + $0x90] sm:$0xff]  ;;  %v476_v16 = vmul.f32 %v1806_v61, %v1806_v61  ;;  %v522_v23 = vadd.f32 %v475_v60, %v474_v8 }
  0x4c   : > { %1346 = vmatprep.subr.mxu1 %v657_v27  ;;  %1236 = vmatprep.subr.mxu0 %v640_v26  ;;  %v1122_v0 = vld [vmem:[%s1658_s10 + $0x198] sm:$0xff]  ;;  %v1814_v3 = vadd.f32 %v1172_v51, %v334_v54  ;;  %v620_v9 = vld [vmem:[%s2228_s1 + $0x10] sm:$0xff]  ;;  %v635_v17 = vld [vmem:[%s2228_s1 + $0x88] sm:$0xff] }
  0x4d   : > { %1347 = vmatpush3.msra.mxu1 %v657_v27  ;;  %1237 = vmatpush3.msra.mxu0 %v624_v28  ;;  %v1170_v1 = vld [vmem:[%s1658_s10 + $0x318] sm:$0xff]  ;;  %v332_v4 = vadd.f32 %v1122_v0, %v235_v63  ;;  %v652_v10 = vld [vmem:[%s2228_s1 + $0x110] sm:$0xff]  ;;  %v1827_v11 = vadd.f32 %v1171_v57, %v333_v62  ;;  %v240_v20 = vld [vmem:[%s1658_s10 + $0x40] sm:$0xff]  ;;  %v1863_v38 = vadd.f32 %v522_v23, %v476_v16 }
  0x4e   : > { %1348 = vmatprep.subr.mxu1 %v656_v29  ;;  %1238 = vmatprep.subr.mxu0 %v639_v31  ;;  %v239_v5 = vld [vmem:[%s1658_s10 + $0x38] sm:$0xff]  ;;  %v238_v13 = vld [vmem:[%s1658_s10 + $0x30] sm:$0xff]  ;;  %v1127_v21 = vld [vmem:[%s1658_s10 + $0x1c0] sm:$0xff]  ;;  %v479_v54 = vmul.f32 %v1814_v3, %v1814_v3 }
  0x4f   : > { %1349 = vmatpush3.msra.mxu1 %v656_v29  ;;  %1239 = vmatpush3.msra.mxu0 %v623_v35  ;;  %v1126_v6 = vld [vmem:[%s1658_s10 + $0x1b8] sm:$0xff]  ;;  %v1125_v14 = vld [vmem:[%s1658_s10 + $0x1b0] sm:$0xff]  ;;  %v1837_v18 = vadd.f32 %v1170_v1, %v332_v4  ;;  %v1175_v22 = vld [vmem:[%s1658_s10 + $0x340] sm:$0xff]  ;;  %v337_v27 = vadd.f32 %v1127_v21, %v240_v20  ;;  %v478_v31 = vmul.f32 %v1827_v11, %v1827_v11 }
  0x50   : > { %1350 = vmatprep.subr.mxu1 %v655_v36  ;;  %v1174_v7 = vld [vmem:[%s1658_s10 + $0x338] sm:$0xff]  ;;  %1240 = vmatprep.subr.mxu0 %v638_v40  ;;  %v336_v12 = vadd.f32 %v1126_v6, %v239_v5  ;;  %v1173_v15 = vld [vmem:[%s1658_s10 + $0x330] sm:$0xff]  ;;  %v335_v19 = vadd.f32 %v1125_v14, %v238_v13  ;;  %v619_v24 = vld [vmem:[%s2228_s1 + $0x8] sm:$0xff] }
  0x51   : > { %1351 = vmatpush3.msra.mxu1 %v655_v36  ;;  %1241 = vmatpush3.msra.mxu0 %v622_v45  ;;  %v651_v25 = vld [vmem:[%s2228_s1 + $0x108] sm:$0xff]  ;;  %v243_v28 = vld [vmem:[%s1658_s10 + $0x58] sm:$0xff]  ;;  %v634_v32 = vld [vmem:[%s2228_s1 + $0x80] sm:$0xff]  ;;  %v1868_v40 = vadd.f32 %v1175_v22, %v337_v27  ;;  %v477_v45 = vmul.f32 %v1837_v18, %v1837_v18 }
  0x52   : > { %1352 = vmatprep.subr.mxu1 %v654_v46  ;;  %1242 = vmatprep.subr.mxu0 %v637_v52  ;;  %v1848_v26 = vadd.f32 %v1174_v7, %v336_v12  ;;  %v1130_v29 = vld [vmem:[%s1658_s10 + $0x1d8] sm:$0xff]  ;;  %v1858_v33 = vadd.f32 %v1173_v15, %v335_v19  ;;  %v242_v35 = vld [vmem:[%s1658_s10 + $0x50] sm:$0xff]  ;;  %v618_v39 = vld [vmem:[%s2228_s1] sm:$0xff] }
  0x53   : > { %1353 = vmatpush3.msra.mxu1 %v654_v46  ;;  %v1178_v30 = vld [vmem:[%s1658_s10 + $0x358] sm:$0xff]  ;;  %1243 = vmatpush3.msra.mxu0 %v621_v58  ;;  %v340_v34 = vadd.f32 %v1130_v29, %v243_v28  ;;  %v1129_v36 = vld [vmem:[%s1658_s10 + $0x1d0] sm:$0xff]  ;;  %v241_v42 = vld [vmem:[%s1658_s10 + $0x48] sm:$0xff]  ;;  %v526_v60 = vadd.f32 %v478_v31, %v477_v45  ;;  %v482_v23 = vmul.f32 %v1868_v40, %v1868_v40 }
  0x54   : > { %1354 = vmatprep.subr.mxu1 %v653_v59  ;;  %v1177_v37 = vld [vmem:[%s1658_s10 + $0x350] sm:$0xff]  ;;  %1244 = vmatprep.subr.mxu0 %v636_v2  ;;  %v339_v41 = vadd.f32 %v1129_v36, %v242_v35  ;;  %v1128_v43 = vld [vmem:[%s1658_s10 + $0x1c8] sm:$0xff]  ;;  %v650_v46 = vld [vmem:[%s2228_s1 + $0x100] sm:$0xff]  ;;  %v480_v4 = vmul.f32 %v1858_v33, %v1858_v33  ;;  %v481_v16 = vmul.f32 %v1848_v26, %v1848_v26 }
  0x55   : > { %1355 = vmatpush3.msra.mxu1 %v653_v59  ;;  %v1176_v44 = vld [vmem:[%s1658_s10 + $0x348] sm:$0xff]  ;;  %1245 = vmatpush3.msra.mxu0 %v620_v9  ;;  %v1878_v48 = vadd.f32 %v1178_v30, %v340_v34  ;;  %v338_v49 = vadd.f32 %v1128_v43, %v241_v42  ;;  %v244_v57 = vld [vmem:[%s1658_s10 + $0x60] sm:$0xff]  ;;  %v246_v0 = vld [vmem:[%s1658_s10 + $0x70] sm:$0xff] }
  0x56   : > { %1356 = vmatprep.subr.mxu1 %v652_v10  ;;  %v245_v50 = vld [vmem:[%s1658_s10 + $0x68] sm:$0xff]  ;;  %1246 = vmatprep.subr.mxu0 %v635_v17  ;;  %v1885_v55 = vadd.f32 %v1177_v37, %v339_v41  ;;  %v1131_v58 = vld [vmem:[%s1658_s10 + $0x1e0] sm:$0xff]  ;;  %v1133_v1 = vld [vmem:[%s1658_s10 + $0x1f0] sm:$0xff]  ;;  %v530_v29 = vadd.f32 %v481_v16, %v480_v4 }
  0x57   : > { %v1132_v51 = vld [vmem:[%s1658_s10 + $0x1e8] sm:$0xff]  ;;  %1357 = vmatpush3.msra.mxu1 %v652_v10  ;;  %v1179_v59 = vld [vmem:[%s1658_s10 + $0x360] sm:$0xff]  ;;  %1247 = vmatpush3.msra.mxu0 %v619_v24  ;;  %v1890_v62 = vadd.f32 %v1176_v44, %v338_v49  ;;  %v341_v63 = vadd.f32 %v1131_v58, %v244_v57  ;;  %v1181_v2 = vld [vmem:[%s1658_s10 + $0x370] sm:$0xff]  ;;  %v343_v6 = vadd.f32 %v1133_v1, %v246_v0 }
  0x58   : > { %v1180_v52 = vld [vmem:[%s1658_s10 + $0x368] sm:$0xff]  ;;  %v342_v56 = vadd.f32 %v1132_v51, %v245_v50  ;;  %1358 = vmatprep.subr.mxu1 %v651_v25  ;;  %1248 = vmatprep.subr.mxu0 %v634_v32  ;;  %v1903_v10 = vadd.f32 %v526_v60, %v479_v54  ;;  %v248_v14 = vld [vmem:[%s1658_s10 + $0x80] sm:$0xff]  ;;  %v247_v20 = vld [vmem:[%s1658_s10 + $0x78] sm:$0xff]  ;;  %v531_v41 = vadd.f32 %v530_v29, %v482_v23 }
  0x59   : > { %730 = vmatprep.mubr.f32.mxu0 %v1785_v47  ;;  %v249_v7 = vld [vmem:[%s1658_s10 + $0x88] sm:$0xff]  ;;  %1249 = vmatpush3.msra.mxu0 %v618_v39  ;;  %v1905_v12 = vadd.f32 %v1179_v59, %v341_v63  ;;  %v1135_v15 = vld [vmem:[%s1658_s10 + $0x200] sm:$0xff]  ;;  %v440_v17 = vadd.f32 %v1181_v2, %v343_v6  ;;  %v1134_v21 = vld [vmem:[%s1658_s10 + $0x1f8] sm:$0xff]  ;;  %v483_v35 = vmul.f32 %v1890_v62, %v1890_v62 }
  0x5a   : > { %v1898_v5 = vadd.f32 %v1180_v52, %v342_v56  ;;  %v1136_v8 = vld [vmem:[%s1658_s10 + $0x208] sm:$0xff]  ;;  %1359 = vmatpush3.msra.mxu1 %v651_v25  ;;  %v1183_v47 = vld [vmem:[%s1658_s10 + $0x380] sm:$0xff]  ;;  %731 = vmatmul.mubr.f32.vlgmr.msra.gmra.mxu0 %v1793_v53  ;;  %v345_v19 = vadd.f32 %v1135_v15, %v248_v14  ;;  %v1182_v22 = vld [vmem:[%s1658_s10 + $0x378] sm:$0xff]  ;;  %v344_v25 = vadd.f32 %v1134_v21, %v247_v20 }
  0x5b   : > { %v1184_v9 = vld [vmem:[%s1658_s10 + $0x388] sm:$0xff]  ;;  %v346_v13 = vadd.f32 %v1136_v8, %v249_v7  ;;  %1360 = vmatprep.subr.mxu1 %v650_v46  ;;  %1362 = vmatprep.mubr.f32.mxu1 %v1806_v61  ;;  %v251_v53 = vld [vmem:[%s1658_s10 + $0x98] sm:$0xff]  ;;  %v250_v32 = vld [vmem:[%s1658_s10 + $0x90] sm:$0xff]  ;;  %v485_v49 = vmul.f32 %v1878_v48, %v1878_v48  ;;  %v486_v54 = vmul.f32 %v1905_v12, %v1905_v12 }
  0x5c   : > { %1361 = vmatpush3.msra.mxu1 %v650_v46  ;;  %v1138_v27 = vld [vmem:[%s1658_s10 + $0x218] sm:$0xff]  ;;  %735 = vmatprep.mubr.f32.mxu0 %v1827_v11  ;;  %v1926_v30 = vadd.f32 %v1183_v47, %v345_v19  ;;  %v1137_v61 = vld [vmem:[%s1658_s10 + $0x210] sm:$0xff]  ;;  %v1934_v36 = vadd.f32 %v1182_v22, %v344_v25  ;;  %v1139_v11 = vld [vmem:[%s1658_s10 + $0x220] sm:$0xff]  ;;  %v484_v46 = vmul.f32 %v1885_v55, %v1885_v55 }
  0x5d   : > { %v1919_v24 = vadd.f32 %v1184_v9, %v346_v13  ;;  %v1186_v28 = vld [vmem:[%s1658_s10 + $0x398] sm:$0xff]  ;;  %1363 = vmatmul.mubr.f32.vlgmr.msra.gmra.mxu1 %v1814_v3  ;;  %v348_v31 = vadd.f32 %v1138_v27, %v251_v53  ;;  %v1185_v34 = vld [vmem:[%s1658_s10 + $0x390] sm:$0xff]  ;;  %v347_v37 = vadd.f32 %v1137_v61, %v250_v32  ;;  %v252_v3 = vld [vmem:[%s1658_s10 + $0xa0] sm:$0xff]  ;;  %524 = vadd.xlane.f32.xlu0 %v1863_v38 }
  0x5e   : > { %1365 = vmatprep.mubr.f32.mxu1 %v1868_v40  ;;  %v1187_v39 = vld [vmem:[%s1658_s10 + $0x3a0] sm:$0xff]  ;;  %736 = vmatmul.mubr.f32.gmra.mxu0 %v1837_v18  ;;  %v349_v43 = vadd.f32 %v1139_v11, %v252_v3  ;;  %v255_v44 = vld [vmem:[%s1658_s10 + $0xb8] sm:$0xff]  ;;  %v254_v50 = vld [vmem:[%s1658_s10 + $0xb0] sm:$0xff]  ;;  %v534_v60 = vadd.f32 %v484_v46, %v483_v35  ;;  %v487_v63 = vmul.f32 %v1898_v5, %v1898_v5 }
  0x5f   : > { %v1941_v42 = vadd.f32 %v1186_v28, %v348_v31  ;;  %v1142_v40 = vld [vmem:[%s1658_s10 + $0x238] sm:$0xff]  ;;  %740 = vmatprep.mubr.f32.mxu0 %v1848_v26  ;;  %v1951_v38 = vadd.f32 %v1185_v34, %v347_v37  ;;  %v1141_v51 = vld [vmem:[%s1658_s10 + $0x230] sm:$0xff]  ;;  %532 = vadd.xlane.f32.xlu1 %v531_v41  ;;  %v253_v58 = vld [vmem:[%s1658_s10 + $0xa8] sm:$0xff]  ;;  %v488_v6 = vmul.f32 %v440_v17, %v440_v17 }
  0x60   : > { %v1190_v45 = vld [vmem:[%s1658_s10 + $0x3b8] sm:$0xff]  ;;  %v352_v18 = vadd.f32 %v1142_v40, %v255_v44  ;;  %v1189_v52 = vld [vmem:[%s1658_s10 + $0x3b0] sm:$0xff]  ;;  %v1959_v56 = vadd.f32 %v1187_v39, %v349_v43  ;;  %v351_v57 = vadd.f32 %v1141_v51, %v254_v50  ;;  %v1140_v26 = vld [vmem:[%s1658_s10 + $0x228] sm:$0xff]  ;;  %v535_v15 = vadd.f32 %v534_v60, %v485_v49 }
  0x61   : > { %1366 = vmatmul.mubr.f32.gmra.mxu1 %v1878_v48  ;;  %v1188_v59 = vld [vmem:[%s1658_s10 + $0x3a8] sm:$0xff]  ;;  %v350_v1 = vadd.f32 %v1140_v26, %v253_v58  ;;  %528 = vadd.xlane.f32.xlu0 %v1903_v10  ;;  %v256_v9 = vld [vmem:[%s1658_s10 + $0xc0] sm:$0xff]  ;;  %v538_v47 = vadd.f32 %v487_v63, %v486_v54  ;;  %v258_v10 = vld [vmem:[%s1658_s10 + $0xd0] sm:$0xff]  ;;  %v489_v20 = vmul.f32 %v1934_v36, %v1934_v36 }
  0x62   : > { %1368 = vmatprep.mubr.f32.mxu1 %v440_v17  ;;  %v1966_v0 = vadd.f32 %v1190_v45, %v352_v18  ;;  %v257_v2 = vld [vmem:[%s1658_s10 + $0xc8] sm:$0xff]  ;;  %741 = vmatmul.mubr.f32.gmra.mxu0 %v1858_v33  ;;  %v1973_v7 = vadd.f32 %v1189_v52, %v351_v57  ;;  %v1143_v13 = vld [vmem:[%s1658_s10 + $0x240] sm:$0xff]  ;;  %v1145_v17 = vld [vmem:[%s1658_s10 + $0x250] sm:$0xff]  ;;  %v490_v21 = vmul.f32 %v1926_v30, %v1926_v30 }
  0x63   : > { %v1144_v48 = vld [vmem:[%s1658_s10 + $0x248] sm:$0xff]  ;;  %v1191_v14 = vld [vmem:[%s1658_s10 + $0x3c0] sm:$0xff]  ;;  %745 = vmatprep.mubr.f32.mxu0 %v1885_v55  ;;  %v1979_v16 = vadd.f32 %v1188_v59, %v350_v1  ;;  %v353_v19 = vadd.f32 %v1143_v13, %v256_v9  ;;  %v1193_v33 = vld [vmem:[%s1658_s10 + $0x3d0] sm:$0xff]  ;;  %v355_v55 = vadd.f32 %v1145_v17, %v258_v10  ;;  %536 = vadd.xlane.f32.xlu1 %v535_v15 }
  0x64   : > { %v1192_v4 = vld [vmem:[%s1658_s10 + $0x3c8] sm:$0xff]  ;;  %v354_v8 = vadd.f32 %v1144_v48, %v257_v2  ;;  %v539_v27 = vadd.f32 %v538_v47, %v488_v6  ;;  %v260_v31 = vld [vmem:[%s1658_s10 + $0xe0] sm:$0xff]  ;;  %v491_v34 = vmul.f32 %v1919_v24, %v1919_v24  ;;  %v542_v35 = vadd.f32 %v490_v21, %v489_v20  ;;  %v259_v11 = vld [vmem:[%s1658_s10 + $0xd8] sm:$0xff] }
  0x65   : > { %1369 = vmatmul.mubr.f32.gmra.mxu1 %v1919_v24  ;;  %v261_v23 = vld [vmem:[%s1658_s10 + $0xe8] sm:$0xff]  ;;  %v1995_v28 = vadd.f32 %v1191_v14, %v353_v19  ;;  %v1147_v32 = vld [vmem:[%s1658_s10 + $0x260] sm:$0xff]  ;;  %v452_v37 = vadd.f32 %v1193_v33, %v355_v55  ;;  %v1146_v39 = vld [vmem:[%s1658_s10 + $0x258] sm:$0xff]  ;;  %v492_v43 = vmul.f32 %v1951_v38, %v1951_v38  ;;  %v493_v49 = vmul.f32 %v1941_v42, %v1941_v42 }
  0x66   : > { %v1989_v22 = vadd.f32 %v1192_v4, %v354_v8  ;;  %v1148_v25 = vld [vmem:[%s1658_s10 + $0x268] sm:$0xff]  ;;  %1371 = vmatprep.mubr.f32.mxu1 %v1959_v56  ;;  %v1195_v61 = vld [vmem:[%s1658_s10 + $0x3e0] sm:$0xff]  ;;  %746 = vmatmul.mubr.f32.gmra.mxu0 %v1890_v62  ;;  %v357_v3 = vadd.f32 %v1147_v32, %v260_v31  ;;  %v1194_v41 = vld [vmem:[%s1658_s10 + $0x3d8] sm:$0xff]  ;;  %v356_v24 = vadd.f32 %v1146_v39, %v259_v11 }
  0x67   : > { %v1196_v53 = vld [vmem:[%s1658_s10 + $0x3e8] sm:$0xff]  ;;  %v358_v29 = vadd.f32 %v1148_v25, %v261_v23  ;;  %540 = vadd.xlane.f32.xlu0 %v539_v27  ;;  %750 = vmatprep.mubr.f32.mxu0 %v1898_v5  ;;  %v263_v40 = vld [vmem:[%s1658_s10 + $0xf8] sm:$0xff]  ;;  %v543_v46 = vadd.f32 %v542_v35, %v491_v34  ;;  %v262_v51 = vld [vmem:[%s1658_s10 + $0xf0] sm:$0xff]  ;;  %v494_v54 = vmul.f32 %v1959_v56, %v1959_v56 }
  0x68   : > { %v1150_v62 = vld [vmem:[%s1658_s10 + $0x278] sm:$0xff]  ;;  %v2017_v18 = vadd.f32 %v1195_v61, %v357_v3  ;;  %v1149_v5 = vld [vmem:[%s1658_s10 + $0x270] sm:$0xff]  ;;  %v495_v57 = vmul.f32 %v1979_v16, %v1979_v16  ;;  %v2026_v58 = vadd.f32 %v1194_v41, %v356_v24  ;;  %v264_v59 = vld [vmem:[%s1658_s10 + $0x100] sm:$0xff]  ;;  %v546_v1 = vadd.f32 %v493_v49, %v492_v43 }
  0x69   : > { %v2009_v44 = vadd.f32 %v1196_v53, %v358_v29  ;;  %v1198_v45 = vld [vmem:[%s1658_s10 + $0x3f8] sm:$0xff]  ;;  %1372 = vmatmul.mubr.f32.gmra.mxu1 %v1966_v0  ;;  %v360_v50 = vadd.f32 %v1150_v62, %v263_v40  ;;  %v1197_v52 = vld [vmem:[%s1658_s10 + $0x3f0] sm:$0xff]  ;;  %v359_v26 = vadd.f32 %v1149_v5, %v262_v51  ;;  %v1151_v60 = vld [vmem:[%s1658_s10 + $0x280] sm:$0xff]  ;;  %544 = vadd.xlane.f32.xlu1 %v543_v46 }
  0x6a   : > { %1374 = vmatprep.mubr.f32.mxu1 %v452_v37  ;;  %v1199_v63 = vld [vmem:[%s1658_s10 + $0x400] sm:$0xff]  ;;  %751 = vmatmul.mubr.f32.gmra.mxu0 %v1905_v12  ;;  %v361_v56 = vadd.f32 %v1151_v60, %v264_v59  ;;  %v267_v48 = vld [vmem:[%s1658_s10 + $0x118] sm:$0xff]  ;;  %v496_v8 = vmul.f32 %v1973_v7, %v1973_v7  ;;  %v497_v9 = vmul.f32 %v1966_v0, %v1966_v0  ;;  %v266_v14 = vld [vmem:[%s1658_s10 + $0x110] sm:$0xff] }
  0x6b   : > { %v2032_v2 = vadd.f32 %v1198_v45, %v360_v50  ;;  %v1154_v4 = vld [vmem:[%s1658_s10 + $0x298] sm:$0xff]  ;;  %755 = vmatprep.mubr.f32.mxu0 %v1926_v30  ;;  %v2042_v13 = vadd.f32 %v1197_v52, %v359_v26  ;;  %v1153_v15 = vld [vmem:[%s1658_s10 + $0x290] sm:$0xff]  ;;  %v547_v19 = vadd.f32 %v546_v1, %v494_v54  ;;  %v498_v10 = vmul.f32 %v1995_v28, %v1995_v28  ;;  %v265_v33 = vld [vmem:[%s1658_s10 + $0x108] sm:$0xff] }
  0x6c   : > { %v1202_v6 = vld [vmem:[%s1658_s10 + $0x418] sm:$0xff]  ;;  %v364_v12 = vadd.f32 %v1154_v4, %v267_v48  ;;  %v1201_v47 = vld [vmem:[%s1658_s10 + $0x410] sm:$0xff]  ;;  %v2050_v17 = vadd.f32 %v1199_v63, %v361_v56  ;;  %v363_v0 = vadd.f32 %v1153_v15, %v266_v14  ;;  %v1152_v30 = vld [vmem:[%s1658_s10 + $0x288] sm:$0xff]  ;;  %v550_v21 = vadd.f32 %v496_v8, %v495_v57 }
  0x6d   : > { %1375 = vmatmul.mubr.f32.gmra.mxu1 %v2009_v44  ;;  %v1200_v20 = vld [vmem:[%s1658_s10 + $0x408] sm:$0xff]  ;;  %v499_v55 = vmul.f32 %v1989_v22, %v1989_v22  ;;  %v362_v25 = vadd.f32 %v1152_v30, %v265_v33  ;;  %548 = vadd.xlane.f32.xlu0 %v547_v19  ;;  %v500_v31 = vmul.f32 %v452_v37, %v452_v37  ;;  %v268_v35 = vld [vmem:[%s1658_s10 + $0x120] sm:$0xff]  ;;  %v270_v43 = vld [vmem:[%s1658_s10 + $0x130] sm:$0xff] }
  0x6e   : > { %v2057_v23 = vadd.f32 %v1202_v6, %v364_v12  ;;  %v269_v53 = vld [vmem:[%s1658_s10 + $0x128] sm:$0xff]  ;;  %v501_v32 = vmul.f32 %v2026_v58, %v2026_v58  ;;  %756 = vmatmul.mubr.f32.gmra.mxu0 %v1934_v36  ;;  %1377 = vmatprep.mubr.f32.mxu1 %v2050_v17  ;;  %v2066_v61 = vadd.f32 %v1201_v47, %v363_v0  ;;  %v1155_v3 = vld [vmem:[%s1658_s10 + $0x2a0] sm:$0xff]  ;;  %v1157_v36 = vld [vmem:[%s1658_s10 + $0x2b0] sm:$0xff] }
  0x6f   : > { %v1156_v27 = vld [vmem:[%s1658_s10 + $0x2a8] sm:$0xff]  ;;  %v1203_v11 = vld [vmem:[%s1658_s10 + $0x420] sm:$0xff]  ;;  %v551_v39 = vadd.f32 %v550_v21, %v497_v9  ;;  %760 = vmatprep.mubr.f32.mxu0 %v1941_v42  ;;  %v2072_v37 = vadd.f32 %v1200_v20, %v362_v25  ;;  %v365_v41 = vadd.f32 %v1155_v3, %v268_v35  ;;  %v1205_v24 = vld [vmem:[%s1658_s10 + $0x430] sm:$0xff]  ;;  %v554_v40 = vadd.f32 %v499_v55, %v498_v10 }
  0x70   : > { %v1204_v29 = vld [vmem:[%s1658_s10 + $0x428] sm:$0xff]  ;;  %v366_v34 = vadd.f32 %v1156_v27, %v269_v53  ;;  %v502_v62 = vmul.f32 %v2017_v18, %v2017_v18  ;;  %v367_v46 = vadd.f32 %v1157_v36, %v270_v43  ;;  %v503_v51 = vmul.f32 %v2009_v44, %v2009_v44  ;;  %v272_v54 = vld [vmem:[%s1658_s10 + $0x140] sm:$0xff]  ;;  %v271_v56 = vld [vmem:[%s1658_s10 + $0x138] sm:$0xff] }
  0x71   : > { %1378 = vmatmul.mubr.f32.gmra.mxu1 %v2057_v23  ;;  %v273_v42 = vld [vmem:[%s1658_s10 + $0x148] sm:$0xff]  ;;  %552 = vadd.xlane.f32.xlu1 %v551_v39  ;;  %v2087_v5 = vadd.f32 %v1203_v11, %v365_v41  ;;  %v1159_v57 = vld [vmem:[%s1658_s10 + $0x2c0] sm:$0xff]  ;;  %v555_v59 = vadd.f32 %v554_v40, %v500_v31  ;;  %v1158_v48 = vld [vmem:[%s1658_s10 + $0x2b8] sm:$0xff]  ;;  %v504_v4 = vmul.f32 %v2042_v13, %v2042_v13 }
  0x72   : > { %v2080_v45 = vadd.f32 %v1204_v29, %v366_v34  ;;  %v1160_v49 = vld [vmem:[%s1658_s10 + $0x2c8] sm:$0xff]  ;;  %v1207_v26 = vld [vmem:[%s1658_s10 + $0x440] sm:$0xff]  ;;  %v558_v60 = vadd.f32 %v502_v62, %v501_v32  ;;  %761 = vmatmul.mubr.f32.gmra.mxu0 %v1951_v38  ;;  %v464_v63 = vadd.f32 %v1205_v24, %v367_v46  ;;  %v369_v1 = vadd.f32 %v1159_v57, %v272_v54  ;;  %v1206_v44 = vld [vmem:[%s1658_s10 + $0x438] sm:$0xff] }
  0x73   : > { %v1208_v50 = vld [vmem:[%s1658_s10 + $0x448] sm:$0xff]  ;;  %v370_v52 = vadd.f32 %v1160_v49, %v273_v42  ;;  %v505_v6 = vmul.f32 %v2032_v2, %v2032_v2  ;;  %765 = vmatprep.mubr.f32.mxu0 %v1973_v7  ;;  %v368_v9 = vadd.f32 %v1158_v48, %v271_v56  ;;  %v275_v12 = vld [vmem:[%s1658_s10 + $0x158] sm:$0xff]  ;;  %556 = vadd.xlane.f32.xlu0 %v555_v59  ;;  %v274_v10 = vld [vmem:[%s1658_s10 + $0x150] sm:$0xff] }
  0x74   : > { %v1162_v38 = vld [vmem:[%s1658_s10 + $0x2d8] sm:$0xff]  ;;  %v559_v15 = vadd.f32 %v558_v60, %v503_v51  ;;  %1380 = vmatprep.mubr.f32.mxu1 %v464_v63  ;;  %v2104_v47 = vadd.f32 %v1207_v26, %v369_v1  ;;  %v1161_v0 = vld [vmem:[%s1658_s10 + $0x2d0] sm:$0xff]  ;;  %v506_v7 = vmul.f32 %v2050_v17, %v2050_v17  ;;  %v276_v55 = vld [vmem:[%s1658_s10 + $0x160] sm:$0xff]  ;;  %v507_v27 = vmul.f32 %v2072_v37, %v2072_v37 }
  0x75   : > { %v467_v8 = vadd.f32 %v1208_v50, %v370_v52  ;;  %v1210_v14 = vld [vmem:[%s1658_s10 + $0x458] sm:$0xff]  ;;  %v372_v19 = vadd.f32 %v1162_v38, %v275_v12  ;;  %v1209_v33 = vld [vmem:[%s1658_s10 + $0x450] sm:$0xff]  ;;  %v562_v30 = vadd.f32 %v505_v6, %v504_v4  ;;  %v2111_v20 = vadd.f32 %v1206_v44, %v368_v9  ;;  %v1163_v25 = vld [vmem:[%s1658_s10 + $0x2e0] sm:$0xff] }
  0x76   : > { %v371_v21 = vadd.f32 %v1161_v0, %v274_v10  ;;  %v1211_v53 = vld [vmem:[%s1658_s10 + $0x460] sm:$0xff]  ;;  %560 = vadd.xlane.f32.xlu1 %v559_v15  ;;  %766 = vmatmul.mubr.f32.gmra.mxu0 %v1979_v16  ;;  %v373_v17 = vadd.f32 %v1163_v25, %v276_v55  ;;  %v279_v31 = vld [vmem:[%s1658_s10 + $0x178] sm:$0xff]  ;;  %v508_v3 = vmul.f32 %v2066_v61, %v2066_v61  ;;  %v278_v41 = vld [vmem:[%s1658_s10 + $0x170] sm:$0xff] }
  0x77   : > { %1381 = vmatmul.mubr.f32.gmra.mxu1 %v467_v8  ;;  %v2119_v29 = vadd.f32 %v1210_v14, %v372_v19  ;;  %v1166_v32 = vld [vmem:[%s1658_s10 + $0x2f8] sm:$0xff]  ;;  %v563_v35 = vadd.f32 %v562_v30, %v506_v7  ;;  %770 = vmatprep.mubr.f32.mxu0 %v1989_v22  ;;  %v1165_v43 = vld [vmem:[%s1658_s10 + $0x2f0] sm:$0xff]  ;;  %v509_v36 = vmul.f32 %v2057_v23, %v2057_v23  ;;  %v277_v46 = vld [vmem:[%s1658_s10 + $0x168] sm:$0xff] }
  0x78   : > { %v1214_v34 = vld [vmem:[%s1658_s10 + $0x478] sm:$0xff]  ;;  %v468_v11 = vadd.f32 %v1209_v33, %v371_v21  ;;  %v376_v39 = vadd.f32 %v1166_v32, %v279_v31  ;;  %v1213_v16 = vld [vmem:[%s1658_s10 + $0x470] sm:$0xff]  ;;  %v510_v24 = vmul.f32 %v2087_v5, %v2087_v5  ;;  %v470_v40 = vadd.f32 %v1211_v53, %v373_v17  ;;  %v1164_v42 = vld [vmem:[%s1658_s10 + $0x2e8] sm:$0xff] }
  0x79   : > { %v375_v62 = vadd.f32 %v1165_v43, %v278_v41  ;;  %v1212_v49 = vld [vmem:[%s1658_s10 + $0x468] sm:$0xff]  ;;  %564 = vadd.xlane.f32.xlu0 %v563_v35  ;;  %v566_v50 = vadd.f32 %v508_v3, %v507_v27  ;;  %v511_v22 = vmul.f32 %v2080_v45, %v2080_v45  ;;  %v374_v52 = vadd.f32 %v1164_v42, %v277_v46  ;;  %s1117_s10 = sshll.u32 %s1105_s16, 4  ;;  %v2159_v27 = vld [vmem:[#allocation4] ss:$0 sm:$0xff] }
  0x7a   : > { %v473_v51 = vadd.f32 %v1214_v34, %v376_v39  ;;  %v512_v54 = vmul.f32 %v464_v63, %v464_v63  ;;  %v513_v57 = vmul.f32 %v2111_v20, %v2111_v20  ;;  %771 = vmatmul.mubr.f32.gmra.mxu0 %v1995_v28  ;;  %1383 = vmatprep.mubr.f32.mxu1 %v470_v40  ;;  %p227_p4 = scmp.lt.s32.totalorder %s1117_s10, 31 }
  0x7b   : > { %v472_v23 = vadd.f32 %v1213_v16, %v375_v62  ;;  %v567_v26 = vadd.f32 %v566_v50, %v509_v36  ;;  %v570_v59 = vadd.f32 %v511_v22, %v510_v24  ;;  %775 = vmatprep.mubr.f32.mxu0 %v2017_v18  ;;  %v471_v60 = vadd.f32 %v1212_v49, %v374_v52 }
  0x7c   : > { %1384 = vmatmul.mubr.f32.gmra.mxu1 %v473_v51  ;;  %v514_v1 = vmul.f32 %v2104_v47, %v2104_v47  ;;  %v515_v56 = vmul.f32 %v467_v8, %v467_v8  ;;  %v516_v63 = vmul.f32 %v468_v11, %v468_v11  ;;  %v517_v44 = vmul.f32 %v2119_v29, %v2119_v29  ;;  %s2242_s10 = smov (!%p227_p4, %s1117_s10), 31 }
  0x7d   : > { %568 = vadd.xlane.f32.xlu1 %v567_v26  ;;  %v571_v48 = vadd.f32 %v570_v59, %v512_v54  ;;  %v518_v4 = vmul.f32 %v470_v40, %v470_v40  ;;  %v519_v6 = vmul.f32 %v471_v60, %v471_v60  ;;  %v520_v9 = vmul.f32 %v472_v23, %v472_v23  ;;  %s1118_s15 = sshll.u32 %s2242_s10, 3 }
  0x7e   : > { %v574_v28 = vadd.f32 %v514_v1, %v513_v57  ;;  %v521_v12 = vmul.f32 %v473_v51, %v473_v51  ;;  %776 = vmatmul.mubr.f32.gmra.mxu0 %v2026_v58  ;;  %v578_v18 = vadd.f32 %v517_v44, %v516_v63  ;;  %s2165_s7 = scalar_lea.vmem %s2230_s3, %s1118_s15 }
  0x7f   : > { %572 = vadd.xlane.f32.xlu0 %v571_v48  ;;  %780 = vmatprep.mubr.f32.mxu0 %v2032_v2  ;;  %v582_v14 = vadd.f32 %v520_v9, %v519_v6 }
  0x80   : > { %v575_v38 = vadd.f32 %v574_v28, %v515_v56  ;;  %v579_v8 = vadd.f32 %v578_v18, %v518_v4 }
  0x81   : > { %v583_v15 = vadd.f32 %v582_v14, %v521_v12 }
  0x82   : > { %576 = vadd.xlane.f32.xlu1 %v575_v38  ;;  %781 = vmatmul.mubr.f32.gmra.mxu0 %v2042_v13 }
  0x83   : > { %580 = vadd.xlane.f32.xlu0 %v579_v8  ;;  %785 = vmatprep.mubr.f32.mxu0 %v2066_v61 }
  0x86   : > { %584 = vadd.xlane.f32.xlu1 %v583_v15  ;;  %786 = vmatmul.mubr.f32.gmra.mxu0 %v2072_v37 }
  0x87   : > { %790 = vmatprep.mubr.f32.mxu0 %v2080_v45 }
  0x8a   : > { %791 = vmatmul.mubr.f32.gmra.mxu0 %v2087_v5 }
  0x8b   : > { %795 = vmatprep.mubr.f32.mxu0 %v2104_v47 }
  0x8e   : > { %796 = vmatmul.mubr.f32.gmra.mxu0 %v2111_v20 }
  0x8f   : > { %800 = vmatprep.mubr.f32.mxu0 %v2119_v29 }
  0x92   : > { %801 = vmatmul.mubr.f32.gmra.mxu0 %v468_v11 }
  0x93   : > { %805 = vmatprep.mubr.f32.mxu0 %v472_v23 }
  0x96   : > { %806 = vmatmul.mubr.f32.gmra.mxu0 %v471_v60 }
  0xe6   : > { %v525_v58 = vpop.xlane.xlu0 %524 }
  0xe7   : > { %v586_v2 = vmax.f32 %v525_v58, 1e-24 }
  0xe8   : > { %v533_v61 = vpop.xlane.xlu1 %532 }
  0xe9   : > { %1447 = vrsqrt.f32 %v586_v2  ;;  %v588_v45 = vmax.f32 %v533_v61, 1e-24 }
  0xea   : > { %v529_v13 = vpop.xlane.xlu0 %528 }
  0xeb   : > { %v587_v37 = vmax.f32 %v529_v13, 1e-24 }
  0xec   : > { %v537_v19 = vpop.xlane.xlu1 %536 }
  0xed   : > { %1449 = vrsqrt.f32 %v587_v37  ;;  %v589_v5 = vmax.f32 %v537_v19, 1e-24 }
  0xee   : > { %1451 = vrsqrt.f32 %v588_v45 }
  0xef   : > { %1453 = vrsqrt.f32 %v589_v5 }
  0xf0   : > { %v541_v10 = vpop.xlane.xlu0 %540 }
  0xf1   : > { %v590_v30 = vmax.f32 %v541_v10, 1e-24 }
  0xf2   : > { %v545_v20 = vpop.xlane.xlu1 %544 }
  0xf3   : > { %1455 = vrsqrt.f32 %v590_v30  ;;  %v591_v34 = vmax.f32 %v545_v20, 1e-24 }
  0xf5   : > { %1457 = vrsqrt.f32 %v591_v34 }
  0xf6   : > { %v1448_v21 = vpop.eup %1447  ;;  %v549_v35 = vpop.xlane.xlu0 %548 }
  0xf7   : > { %v592_v36 = vmax.f32 %v549_v35, 1e-24 }
  0xf9   : > { %1459 = vrsqrt.f32 %v592_v36 }
  0xfa   : > { %v1450_v3 = vpop.eup %1449  ;;  %v553_v49 = vpop.xlane.xlu1 %552 }
  0xfb   : > { %v1452_v46 = vpop.eup %1451  ;;  %v593_v26 = vmax.f32 %v553_v49, 1e-24 }
  0xfc   : > { %v557_v59 = vpop.xlane.xlu0 %556  ;;  %v1454_v60 = vpop.eup %1453 }
  0xfd   : > { %v594_v4 = vmax.f32 %v557_v59, 1e-24  ;;  %1461 = vrsqrt.f32 %v593_v26 }
  0xff   : > { %v561_v38 = vpop.xlane.xlu1 %560  ;;  %1463 = vrsqrt.f32 %v594_v4 }
 0x100   : > { %v1456_v12 = vpop.eup %1455  ;;  %v595_v37 = vmax.f32 %v561_v38, 1e-24 }
 0x102   : > { %v565_v45 = vpop.xlane.xlu0 %564  ;;  %v1458_v19 = vpop.eup %1457  ;;  %1465 = vrsqrt.f32 %v595_v37 }
 0x106   : > { %v1460_v30 = vpop.eup %1459 }
 0x11a   : > { %v1250_v47 = vpop.f32.mrf.mxu0 }
 0x11c   : > { %v1251_v0 = vpop.f32.mrf.mxu0 }
 0x11d   : > { %v1364_v33 = vpop.f32.mrf.mxu1  ;;  %v1252_v7 = vadd.f32 %v1251_v0, %v1250_v47 }
 0x11e   : > { %v1253_v55 = vpop.f32.mrf.mxu0 }
 0x11f   : > { %v877_v25 = vpop.f32.mrf.mxu1 }
 0x120   : > { %v878_v53 = vadd.f32 %v1252_v7, %v877_v25  ;;  %v1254_v29 = vpop.f32.mrf.mxu0  ;;  %v596_v7 = vmax.f32 %v565_v45, 1e-24 }
 0x121   : > { %v1367_v17 = vpop.f32.mrf.mxu1  ;;  %v1255_v32 = vadd.f32 %v1254_v29, %v1253_v55 }
 0x122   : > { %v956_v31 = vmul.f32 %v1448_v21, %v878_v53  ;;  %v1256_v11 = vpop.f32.mrf.mxu0  ;;  %v569_v53 = vpop.xlane.xlu1 %568  ;;  %1467 = vrsqrt.f32 %v596_v7 }
 0x123   : > { %v883_v41 = vadd.f32 %v1364_v33, %v1255_v32  ;;  %v887_v16 = vpop.f32.mrf.mxu1 }
 0x124   : > { %v979_v39 = vadd.f32 %v2159_v27, %v956_v31  ;;  %v1257_v43 = vpop.f32.mrf.mxu0 }
 0x125   : > { %v957_v40 = vmul.f32 %v1450_v3, %v883_v41  ;;  %v1258_v62 = vadd.f32 %v1257_v43, %v1256_v11  ;;  %v1370_v52 = vpop.f32.mrf.mxu1  ;;  %v597_v11 = vmax.f32 %v569_v53, 1e-24  ;;  %v1462_v41 = vpop.eup %1461 }
 0x126   : > { %v995_v24 = vmax.f32 %v979_v39, 0.0  ;;  %v1259_v42 = vpop.f32.mrf.mxu0  ;;  %v573_v39 = vpop.xlane.xlu0 %572 }
 0x127   : > { %v980_v50 = vadd.f32 %v2159_v27, %v957_v40  ;;  %v888_v22 = vadd.f32 %v1258_v62, %v887_v16  ;;  %v897_v44 = vpop.f32.mrf.mxu1  ;;  %v598_v62 = vmax.f32 %v573_v39, 1e-24  ;;  %1469 = vrsqrt.f32 %v597_v11 }
 0x128   : > { %1012 = vst.msk [vmem:[%s2165_s7] sm:$0xff] %vm1011_vm0, %v995_v24  ;;  %v1260_v51 = vpop.f32.mrf.mxu0 }
 0x129   : > { %v996_v54 = vmax.f32 %v980_v50, 0.0  ;;  %v958_v57 = vmul.f32 %v1452_v46, %v888_v22  ;;  %v1261_v23 = vadd.f32 %v1260_v51, %v1259_v42  ;;  %v1373_v58 = vpop.f32.mrf.mxu1  ;;  %v1464_v46 = vpop.eup %1463  ;;  %1471 = vrsqrt.f32 %v598_v62 }
 0x12a   : > { %v1262_v1 = vpop.f32.mrf.mxu0  ;;  %v577_v51 = vpop.xlane.xlu1 %576 }
 0x12b   : > { %1013 = vst.msk [vmem:[%s2165_s7 + $0x8] sm:$0xff] %vm1011_vm0, %v996_v54  ;;  %v981_v56 = vadd.f32 %v2159_v27, %v958_v57  ;;  %v893_v48 = vadd.f32 %v1367_v17, %v1261_v23  ;;  %v907_v33 = vpop.f32.mrf.mxu1 }
 0x12c   : > { %v1263_v63 = vpop.f32.mrf.mxu0 }
 0x12d   : > { %v997_v28 = vmax.f32 %v981_v56, 0.0  ;;  %v959_v6 = vmul.f32 %v1454_v60, %v893_v48  ;;  %v1264_v9 = vadd.f32 %v1263_v63, %v1262_v1  ;;  %v1376_v32 = vpop.f32.mrf.mxu1  ;;  %v599_v1 = vmax.f32 %v577_v51, 1e-24  ;;  %v581_v56 = vpop.xlane.xlu0 %580 }
 0x12e   : > { %v1265_v18 = vpop.f32.mrf.mxu0  ;;  %v1466_v48 = vpop.eup %1465 }
 0x12f   : > { %1014 = vst.msk [vmem:[%s2165_s7 + $0x10] sm:$0xff] %vm1011_vm0, %v997_v28  ;;  %v982_v14 = vadd.f32 %v2159_v27, %v959_v6  ;;  %v898_v8 = vadd.f32 %v1264_v9, %v897_v44  ;;  %v917_v40 = vpop.f32.mrf.mxu1  ;;  %v600_v9 = vmax.f32 %v581_v56, 1e-24  ;;  %1473 = vrsqrt.f32 %v599_v1 }
 0x130   : > { %v1266_v15 = vpop.f32.mrf.mxu0 }
 0x131   : > { %v998_v2 = vmax.f32 %v982_v14, 0.0  ;;  %v960_v13 = vmul.f32 %v1456_v12, %v898_v8  ;;  %v1267_v61 = vadd.f32 %v1266_v15, %v1265_v18  ;;  %v1379_v23 = vpop.f32.mrf.mxu1  ;;  %v1468_v12 = vpop.eup %1467  ;;  %1475 = vrsqrt.f32 %v600_v9 }
 0x132   : > { %v1268_v5 = vpop.f32.mrf.mxu0  ;;  %v585_v15 = vpop.xlane.xlu1 %584 }
 0x133   : > { %1015 = vst.msk [vmem:[%s2165_s7 + $0x18] sm:$0xff] %vm1011_vm0, %v998_v2  ;;  %v983_v47 = vadd.f32 %v2159_v27, %v960_v13  ;;  %v903_v10 = vadd.f32 %v1370_v52, %v1267_v61  ;;  %v927_v6 = vpop.f32.mrf.mxu1 }
 0x134   : > { %v1269_v0 = vpop.f32.mrf.mxu0 }
 0x135   : > { %v999_v20 = vmax.f32 %v983_v47, 0.0  ;;  %v961_v21 = vmul.f32 %v1458_v19, %v903_v10  ;;  %v1270_v55 = vadd.f32 %v1269_v0, %v1268_v5  ;;  %v601_v5 = vmax.f32 %v585_v15, 1e-24  ;;  %v1470_v47 = vpop.eup %1469 }
 0x136   : > { %v1271_v25 = vpop.f32.mrf.mxu0 }
 0x137   : > { %1016 = vst.msk [vmem:[%s2165_s7 + $0x20] sm:$0xff] %vm1011_vm0, %v999_v20  ;;  %v984_v29 = vadd.f32 %v2159_v27, %v961_v21  ;;  %v908_v17 = vadd.f32 %v1270_v55, %v907_v33  ;;  %v1382_v61 = vpop.f32.mrf.mxu1  ;;  %v1472_v20 = vpop.eup %1471  ;;  %1477 = vrsqrt.f32 %v601_v5 }
 0x138   : > { %v1272_v31 = vpop.f32.mrf.mxu0 }
 0x139   : > { %v1000_v34 = vmax.f32 %v984_v29, 0.0  ;;  %v962_v35 = vmul.f32 %v1460_v30, %v908_v17  ;;  %v1273_v3 = vadd.f32 %v1272_v31, %v1271_v25  ;;  %v937_v30 = vpop.f32.mrf.mxu1 }
 0x13a   : > { %v1274_v43 = vpop.f32.mrf.mxu0 }
 0x13b   : > { %1017 = vst.msk [vmem:[%s2165_s7 + $0x28] sm:$0xff] %vm1011_vm0, %v1000_v34  ;;  %v985_v16 = vadd.f32 %v2159_v27, %v962_v35  ;;  %v913_v36 = vadd.f32 %v1373_v58, %v1273_v3 }
 0x13c   : > { %v1275_v24 = vpop.f32.mrf.mxu0  ;;  %v1474_v11 = vpop.eup %1473 }
 0x13d   : > { %v1001_v42 = vmax.f32 %v985_v16, 0.0  ;;  %v963_v49 = vmul.f32 %v1462_v41, %v913_v36  ;;  %v1276_v50 = vadd.f32 %v1275_v24, %v1274_v43 }
 0x13e   : > { %v1277_v22 = vpop.f32.mrf.mxu0  ;;  %v1476_v24 = vpop.eup %1475 }
 0x13f   : > { %1018 = vst.msk [vmem:[%s2165_s7 + $0x30] sm:$0xff] %vm1011_vm0, %v1001_v42  ;;  %v986_v52 = vadd.f32 %v2159_v27, %v963_v49  ;;  %v918_v54 = vadd.f32 %v1276_v50, %v917_v40 }
 0x140   : > { %v1278_v57 = vpop.f32.mrf.mxu0 }
 0x141   : > { %v1002_v26 = vmax.f32 %v986_v52, 0.0  ;;  %v964_v59 = vmul.f32 %v1464_v46, %v918_v54  ;;  %v1279_v60 = vadd.f32 %v1278_v57, %v1277_v22 }
 0x142   : > { %v1280_v63 = vpop.f32.mrf.mxu0 }
 0x143   : > { %1019 = vst.msk [vmem:[%s2165_s7 + $0x38] sm:$0xff] %vm1011_vm0, %v1002_v26  ;;  %v987_v44 = vadd.f32 %v2159_v27, %v964_v59  ;;  %v923_v4 = vadd.f32 %v1376_v32, %v1279_v60  ;;  %v1385_v32 = vpop.f32.mrf.mxu1 }
 0x144   : > { %v1281_v28 = vpop.f32.mrf.mxu0  ;;  %v1478_v57 = vpop.eup %1477 }
 0x145   : > { %v1003_v18 = vmax.f32 %v987_v44, 0.0  ;;  %v965_v38 = vmul.f32 %v1466_v48, %v923_v4  ;;  %v1282_v14 = vadd.f32 %v1281_v28, %v1280_v63  ;;  %v947_v36 = vpop.f32.mrf.mxu1 }
 0x146   : > { %v1283_v8 = vpop.f32.mrf.mxu0 }
 0x147   : > { %1020 = vst.msk [vmem:[%s2165_s7 + $0x40] sm:$0xff] %vm1011_vm0, %v1003_v18  ;;  %v988_v58 = vadd.f32 %v2159_v27, %v965_v38  ;;  %v928_v2 = vadd.f32 %v1282_v14, %v927_v6 }
 0x148   : > { %v1284_v13 = vpop.f32.mrf.mxu0 }
 0x149   : > { %v1004_v37 = vmax.f32 %v988_v58, 0.0  ;;  %v966_v45 = vmul.f32 %v1468_v12, %v928_v2  ;;  %v1285_v19 = vadd.f32 %v1284_v13, %v1283_v8 }
 0x14a   : > { %v1286_v10 = vpop.f32.mrf.mxu0 }
 0x14b   : > { %1021 = vst.msk [vmem:[%s2165_s7 + $0x48] sm:$0xff] %vm1011_vm0, %v1004_v37  ;;  %v989_v0 = vadd.f32 %v2159_v27, %v966_v45  ;;  %v933_v33 = vadd.f32 %v1379_v23, %v1285_v19 }
 0x14c   : > { %v1287_v7 = vpop.f32.mrf.mxu0 }
 0x14d   : > { %v1005_v21 = vmax.f32 %v989_v0, 0.0  ;;  %v967_v55 = vmul.f32 %v1470_v47, %v933_v33  ;;  %v1288_v25 = vadd.f32 %v1287_v7, %v1286_v10 }
 0x14e   : > { %v1289_v53 = vpop.f32.mrf.mxu0 }
 0x14f   : > { %1022 = vst.msk [vmem:[%s2165_s7 + $0x50] sm:$0xff] %vm1011_vm0, %v1005_v21  ;;  %v990_v29 = vadd.f32 %v2159_v27, %v967_v55  ;;  %v938_v17 = vadd.f32 %v1288_v25, %v937_v30 }
 0x150   : > { %v1290_v31 = vpop.f32.mrf.mxu0 }
 0x151   : > { %v1006_v34 = vmax.f32 %v990_v29, 0.0  ;;  %v968_v35 = vmul.f32 %v1472_v20, %v938_v17  ;;  %v1291_v3 = vadd.f32 %v1290_v31, %v1289_v53 }
 0x152   : > { %v1292_v39 = vpop.f32.mrf.mxu0 }
 0x153   : > { %1023 = vst.msk [vmem:[%s2165_s7 + $0x58] sm:$0xff] %vm1011_vm0, %v1006_v34  ;;  %v991_v41 = vadd.f32 %v2159_v27, %v968_v35  ;;  %v943_v43 = vadd.f32 %v1382_v61, %v1291_v3 }
 0x154   : > { %v1293_v16 = vpop.f32.mrf.mxu0 }
 0x155   : > { %v1007_v40 = vmax.f32 %v991_v41, 0.0  ;;  %v969_v62 = vmul.f32 %v1474_v11, %v943_v43  ;;  %v1294_v46 = vadd.f32 %v1293_v16, %v1292_v39 }
 0x156   : > { %v1295_v42 = vpop.f32.mrf.mxu0 }
 0x157   : > { %1024 = vst.msk [vmem:[%s2165_s7 + $0x60] sm:$0xff] %vm1011_vm0, %v1007_v40  ;;  %v992_v49 = vadd.f32 %v2159_v27, %v969_v62  ;;  %v948_v50 = vadd.f32 %v1294_v46, %v947_v36 }
 0x158   : > { %v1296_v22 = vpop.f32.mrf.mxu0 }
 0x159   : > { %v1008_v51 = vmax.f32 %v992_v49, 0.0  ;;  %v970_v52 = vmul.f32 %v1476_v24, %v948_v50  ;;  %v1297_v54 = vadd.f32 %v1296_v22, %v1295_v42 }
 0x15b   : > { %1025 = vst.msk [vmem:[%s2165_s7 + $0x68] sm:$0xff] %vm1011_vm0, %v1008_v51  ;;  %v993_v23 = vadd.f32 %v2159_v27, %v970_v52  ;;  %v953_v26 = vadd.f32 %v1385_v32, %v1297_v54 }
 0x15d   : > { %v1009_v59 = vmax.f32 %v993_v23, 0.0  ;;  %v971_v60 = vmul.f32 %v1478_v57, %v953_v26 }
 0x15f   : > { %1026 = vst.msk [vmem:[%s2165_s7 + $0x70] sm:$0xff] %vm1011_vm0, %v1009_v59  ;;  %v994_v1 = vadd.f32 %v2159_v27, %v971_v60 }
 0x161   : > { %v1010_v56 = vmax.f32 %v994_v1, 0.0 }
 0x163   : > { %1027 = vst.msk [vmem:[%s2165_s7 + $0x78] sm:$0xff] %vm1011_vm0, %v1010_v56 }
 0x164 PF: > { %p14_p5 = scmp.ge.s32.totalorder %s1592_s17, 4   ;;  %s2237_s12 = smov %s1535_s13 }
 0x165   : > { %s2238_s13 = smov %s1539_s14  ;;  %s2239_s14 = smov %s1602_s20 }
 0x166   : > { %s2240_s15 = smov %s1592_s17  ;;  %16 = sbr.rel (!%p14_p5) target bundleno = 4 (0x4), region = 83 }
 0x16b   :  { %1050 = vsyncpa [#allocation3], 1 }
 0x16c   :  { %1052 = vsyncpa [#allocation3 + $0x1], 1 }
 0x16d   :  { %1053 = vsyncpa [#allocation5], 1 }

</bundles_post_ra>
